<compile_context>
chip_gen: v7x
topology: tpu7x:2x2x1
jax: 0.10.0
libtpu: 0.0.40
codegen_flags: <defaults>
</compile_context>

<pallas_src>
import jax
import jax.numpy as jnp
from jax.experimental import pallas as pl
from jax.experimental.pallas import tpu as pltpu


def _residual_mlp_kernel(x_ref, w1t_ref, b1_ref, w2t_ref, b2_ref, o_ref):
    # x_ref: (1, C, tile_s) tile of the NCHW-flattened input (lane axis = spatial).
    # Weights are tiny and stay resident in VMEM (constant index maps).
    x = x_ref[0].astype(jnp.float32)                                  # (C, tile_s)
    h = jnp.dot(w1t_ref[...].astype(jnp.float32), x,
                preferred_element_type=jnp.float32) + b1_ref[...]     # (hidden, tile_s)
    h = jax.nn.gelu(h, approximate=True)
    y = jnp.dot(w2t_ref[...].astype(jnp.float32), h,
                preferred_element_type=jnp.float32) + b2_ref[...]     # (C, tile_s)
    # Residual: fn(x) + x  (the semantics of the Residual module)
    o_ref[0] = (y + x).astype(o_ref.dtype)


def _pick_tile_s(S, cap):
    """Largest multiple of 128 that divides S (<= cap); else one full block."""
    if S % 128 != 0:
        return S  # block_shape == full dim is always legal
    best = 128
    t = 128
    limit = min(S, cap)
    while t <= limit:
        if S % t == 0:
            best = t
        t += 128
    return best


def residual_forward(x_nchw, w1, b1, w2, b2, *, max_tile_s=2048):
    """Residual(fn)(x) = fn(x) + x, fn = pointwise MLP, fused in one Pallas kernel."""
    N, C, H, W = x_nchw.shape
    hidden = w1.shape[1]
    S = H * W

    tile_s = _pick_tile_s(S, max_tile_s)

    # Free view: NCHW is already (N, C, H*W)-contiguous — no transpose, no pad.
    x3d = x_nchw.reshape(N, C, S)

    # Transposed weights so the spatial axis stays on the lane dimension.
    w1t = jnp.transpose(w1)          # (hidden, C)
    w2t = jnp.transpose(w2)          # (C, hidden)
    b1c = b1.reshape(hidden, 1)
    b2c = b2.reshape(C, 1)

    # Size the scoped VMEM limit from actual tile usage (safe on v7x's 64 MiB).
    itemsize = jnp.dtype(x_nchw.dtype).itemsize
    tile_bytes = C * tile_s * itemsize
    param_bytes = (2 * hidden * C + hidden + C) * 4
    needed = (
        4 * tile_bytes                      # double-buffered in + out tiles
        + 2 * param_bytes                   # resident weights/biases
        + (hidden + 2 * C) * tile_s * 4     # f32 intermediates
        + (2 << 20)                         # compiler scratch margin
    )
    vmem_limit = int(min(64 << 20, max(16 << 20, needed)))

    out3d = pl.pallas_call(
        _residual_mlp_kernel,
        out_shape=jax.ShapeDtypeStruct((N, C, S), x_nchw.dtype),
        grid_spec=pltpu.PrefetchScalarGridSpec(
            num_scalar_prefetch=0,
            grid=(N, S // tile_s),
            in_specs=[
                pl.BlockSpec((1, C, tile_s), lambda n, s: (n, 0, s)),   # x tile
                pl.BlockSpec((hidden, C), lambda n, s: (0, 0)),         # w1^T (resident)
                pl.BlockSpec((hidden, 1), lambda n, s: (0, 0)),         # b1
                pl.BlockSpec((C, hidden), lambda n, s: (0, 0)),         # w2^T (resident)
                pl.BlockSpec((C, 1), lambda n, s: (0, 0)),              # b2
            ],
            out_specs=pl.BlockSpec((1, C, tile_s), lambda n, s: (n, 0, s)),
        ),
        compiler_params=pltpu.CompilerParams(
            dimension_semantics=("parallel", "parallel"),
            vmem_limit_bytes=vmem_limit,
        ),
    )(x3d, w1t, b1c, w2t, b2c)

    return out3d.reshape(N, C, H, W)


def _reference(x_nchw, w1, b1, w2, b2):
    # Pure-JAX reference of fn(x) + x with the same fn (same GELU form).
    N, C, H, W = x_nchw.shape
    x = jnp.transpose(x_nchw, (0, 2, 3, 1)).astype(jnp.float32)   # (N,H,W,C)
    h = jax.nn.gelu(x @ w1 + b1, approximate=True)
    y = h @ w2 + b2
    out = y + x
    return jnp.transpose(out, (0, 3, 1, 2)).astype(x_nchw.dtype)


if __name__ == "__main__":
    key = jax.random.PRNGKey(0)
    k_x, k_w1, k_b1, k_w2, k_b2 = jax.random.split(key, 5)

    N, C, H, W = 2, 4, 16, 16
    hidden = 32

    x = jax.random.normal(k_x, (N, C, H, W), dtype=jnp.float32)
    # Deterministic synthetic parameters for fn (pointwise MLP).
    w1 = jax.random.normal(k_w1, (C, hidden), dtype=jnp.float32) * (1.0 / C) ** 0.5
    b1 = jax.random.normal(k_b1, (hidden,), dtype=jnp.float32) * 0.01
    w2 = jax.random.normal(k_w2, (hidden, C), dtype=jnp.float32) * (1.0 / hidden) ** 0.5
    b2 = jax.random.normal(k_b2, (C,), dtype=jnp.float32) * 0.01

    out = residual_forward(x, w1, b1, w2, b2)
    out = jax.block_until_ready(out)

    ref = _reference(x, w1, b1, w2, b2)
    assert out.shape == x.shape and out.dtype == x.dtype
    assert jnp.allclose(out, ref, atol=1e-4, rtol=1e-4), "mismatch vs reference"

    print("KERNEL_OK")
</pallas_src>

<mosaic_0001>
module attributes {stable_mosaic.version = 11 : i64} {
  func.func @_residual_mlp_kernel(%arg0: i32, %arg1: i32, %arg2: memref<1x4x256xf32, #tpu.memory_space<vmem>>, %arg3: memref<32x4xf32, #tpu.memory_space<vmem>>, %arg4: memref<32x1xf32, #tpu.memory_space<vmem>>, %arg5: memref<4x32xf32, #tpu.memory_space<vmem>>, %arg6: memref<4x1xf32, #tpu.memory_space<vmem>>, %arg7: memref<1x4x256xf32, #tpu.memory_space<vmem>>) attributes {dimension_semantics = [#tpu.dimension_semantics<parallel>, #tpu.dimension_semantics<parallel>], iteration_bounds = array<i64: 2, 1>, scalar_prefetch = 0 : i64, scratch_operands = 0 : i64, tpu.core_type = #tpu.core_type<tc>, window_params = [{transform_indices = @transform_0, window_bounds = array<i64: 1, 4, 256>}, {pipeline_mode = #tpu.pipeline_mode<synchronous>, transform_indices = @transform_1, window_bounds = array<i64: 32, 4>}, {pipeline_mode = #tpu.pipeline_mode<synchronous>, transform_indices = @transform_2, window_bounds = array<i64: 32, 1>}, {pipeline_mode = #tpu.pipeline_mode<synchronous>, transform_indices = @transform_3, window_bounds = array<i64: 4, 32>}, {pipeline_mode = #tpu.pipeline_mode<synchronous>, transform_indices = @transform_4, window_bounds = array<i64: 4, 1>}, {transform_indices = @transform_5, window_bounds = array<i64: 1, 4, 256>}]} {
    %c0 = arith.constant 0 : index
    %c0_0 = arith.constant 0 : index
    %c0_1 = arith.constant 0 : index
    %0 = vector.load %arg2[%c0, %c0_0, %c0_1] : memref<1x4x256xf32, #tpu.memory_space<vmem>>, vector<1x4x256xf32>
    %1 = vector.shape_cast %0 : vector<1x4x256xf32> to vector<4x256xf32>
    %c0_2 = arith.constant 0 : index
    %c0_3 = arith.constant 0 : index
    %2 = vector.load %arg3[%c0_2, %c0_3] : memref<32x4xf32, #tpu.memory_space<vmem>>, vector<32x4xf32>
    %cst = arith.constant dense<0.000000e+00> : vector<32x256xf32>
    %3 = tpu.matmul %2, %1, %cst {dimension_numbers = #tpu.dot_dimension_numbers<[1], [0], [0], [1], [0, 0, 1, 1], [], []>} : vector<32x4xf32>, vector<4x256xf32>, vector<32x256xf32> -> vector<32x256xf32>
    %c0_4 = arith.constant 0 : index
    %c0_5 = arith.constant 0 : index
    %4 = vector.load %arg4[%c0_4, %c0_5] : memref<32x1xf32, #tpu.memory_space<vmem>>, vector<32x1xf32>
    %5 = vector.broadcast %4 : vector<32x1xf32> to vector<32x256xf32>
    %6 = arith.addf %3, %5 : vector<32x256xf32>
    %7 = arith.mulf %6, %6 : vector<32x256xf32>
    %8 = arith.mulf %6, %7 : vector<32x256xf32>
    %cst_6 = arith.constant 4.471500e-02 : f32
    %9 = vector.broadcast %cst_6 : f32 to vector<32x256xf32>
    %10 = arith.mulf %9, %8 : vector<32x256xf32>
    %11 = arith.addf %6, %10 : vector<32x256xf32>
    %cst_7 = arith.constant 0.797884583 : f32
    %12 = vector.broadcast %cst_7 : f32 to vector<32x256xf32>
    %13 = arith.mulf %12, %11 : vector<32x256xf32>
    %14 = math.tanh %13 : vector<32x256xf32>
    %cst_8 = arith.constant 1.000000e+00 : f32
    %15 = vector.broadcast %cst_8 : f32 to vector<32x256xf32>
    %16 = arith.addf %15, %14 : vector<32x256xf32>
    %cst_9 = arith.constant 5.000000e-01 : f32
    %17 = vector.broadcast %cst_9 : f32 to vector<32x256xf32>
    %18 = arith.mulf %17, %16 : vector<32x256xf32>
    %19 = arith.mulf %6, %18 : vector<32x256xf32>
    %c0_10 = arith.constant 0 : index
    %c0_11 = arith.constant 0 : index
    %20 = vector.load %arg5[%c0_10, %c0_11] : memref<4x32xf32, #tpu.memory_space<vmem>>, vector<4x32xf32>
    %cst_12 = arith.constant dense<0.000000e+00> : vector<4x256xf32>
    %21 = tpu.matmul %20, %19, %cst_12 {dimension_numbers = #tpu.dot_dimension_numbers<[1], [0], [0], [1], [0, 0, 1, 1], [], []>} : vector<4x32xf32>, vector<32x256xf32>, vector<4x256xf32> -> vector<4x256xf32>
    %c0_13 = arith.constant 0 : index
    %c0_14 = arith.constant 0 : index
    %22 = vector.load %arg6[%c0_13, %c0_14] : memref<4x1xf32, #tpu.memory_space<vmem>>, vector<4x1xf32>
    %23 = vector.broadcast %22 : vector<4x1xf32> to vector<4x256xf32>
    %24 = arith.addf %21, %23 : vector<4x256xf32>
    %25 = arith.addf %24, %1 : vector<4x256xf32>
    %c0_15 = arith.constant 0 : index
    %c0_16 = arith.constant 0 : index
    %c0_17 = arith.constant 0 : index
    %26 = vector.load %arg7[%c0_15, %c0_16, %c0_17] : memref<1x4x256xf32, #tpu.memory_space<vmem>>, vector<1x4x256xf32>
    %27 = vector.shape_cast %26 : vector<1x4x256xf32> to vector<4x256xf32>
    %28 = vector.shape_cast %25 : vector<4x256xf32> to vector<1x4x256xf32>
    tpu.vector_store %arg7[%c0_15, %c0_16, %c0_17], %28 {strides = array<i32>} : memref<1x4x256xf32, #tpu.memory_space<vmem>>, vector<1x4x256xf32>,
    return
  }
  func.func @transform_0(%arg0: i32, %arg1: i32) -> (i32, i32, i32) {
    %c0_i32 = arith.constant 0 : i32
    %c0_i32_0 = arith.constant 0 : i32
    return %arg0, %c0_i32, %arg1 : i32, i32, i32
  }
  func.func @transform_1(%arg0: i32, %arg1: i32) -> (i32, i32) {
    %c0_i32 = arith.constant 0 : i32
    %c0_i32_0 = arith.constant 0 : i32
    %c0_i32_1 = arith.constant 0 : i32
    return %c0_i32, %c0_i32_0 : i32, i32
  }
  func.func @transform_2(%arg0: i32, %arg1: i32) -> (i32, i32) {
    %c0_i32 = arith.constant 0 : i32
    %c0_i32_0 = arith.constant 0 : i32
    %c0_i32_1 = arith.constant 0 : i32
    return %c0_i32, %c0_i32_0 : i32, i32
  }
  func.func @transform_3(%arg0: i32, %arg1: i32) -> (i32, i32) {
    %c0_i32 = arith.constant 0 : i32
    %c0_i32_0 = arith.constant 0 : i32
    %c0_i32_1 = arith.constant 0 : i32
    return %c0_i32, %c0_i32_0 : i32, i32
  }
  func.func @transform_4(%arg0: i32, %arg1: i32) -> (i32, i32) {
    %c0_i32 = arith.constant 0 : i32
    %c0_i32_0 = arith.constant 0 : i32
    %c0_i32_1 = arith.constant 0 : i32
    return %c0_i32, %c0_i32_0 : i32, i32
  }
  func.func @transform_5(%arg0: i32, %arg1: i32) -> (i32, i32, i32) {
    %c0_i32 = arith.constant 0 : i32
    %c0_i32_0 = arith.constant 0 : i32
    return %arg0, %c0_i32, %arg1 : i32, i32, i32
  }
}

</mosaic_0001>

<bundles_post_ra>
// kernel: tpu_custom_call.1
= control target key start
LH: loop header
LB: loop body
LE: loop exit
PB: predicated region body
PF: predicated region fallthrough
CT: control target
= control target key end

     0   :  { %10 = vsyncpa [#allocation3], 0  ;;  %s1067_s0 = inlined_call_operand.vmem [shape: f32[2,4,256], index: 0, kind: input, shape index: {}]   ;;  %s1068_s1 = inlined_call_operand.vmem [shape: f32[32,4], index: 1, kind: input, shape index: {}]   ;;  %s1069_s2 = inlined_call_operand.vmem [shape: f32[32,1], index: 2, kind: input, shape index: {}]   ;;  %s1070_s3 = inlined_call_operand.vmem [shape: f32[4,32], index: 3, kind: input, shape index: {}]   ;;  %s1071_s4 = inlined_call_operand.vmem [shape: f32[4,1], index: 4, kind: input, shape index: {}]   ;;  %s1072_s5 = inlined_call_operand.hbm [shape: f32[2,4,256], index: 5, kind: output, shape index: {}]  }
   0x1   :  { %12 = vsyncpa [#allocation3 + $0x1], 0  ;;  %s866_s18 = smov 0   ;;  %s868_s19 = smov 0  }
   0x2   :  { %s870_s20 = smov 0   ;;  %s872_s21 = smov 0  }
   0x3   :  { %s874_s22 = smov 0   ;;  %s876_s23 = smov 0  }
   0x4 LB: > { %s647_s24 = sadd.s32 4294967295, %s831_s23   ;;  %s648_s25 = sadd.s32 4294967294, %s831_s23   ;;  %s831_s23 = sphi %s876_s23, %s18_s23   ;;  %s827_s22 = sphi %s874_s22, %s1079_s22   ;;  %s823_s21 = sphi %s872_s21, %s1078_s21   ;;  %s819_s20 = sphi %s870_s20, %s1077_s20   ;;  %s815_s19 = sphi %s868_s19, %s1076_s19   ;;  %s811_s18 = sphi %s866_s18, %s1075_s18  }
   0x5   : > { %s30_s26 = sadd.s32 1, %s827_s22  ;;  %s151_s27 = sadd.s32 1, %s819_s20 }
   0x6   : > { %p32_p0 = scmp.ge.s32.totalorder %s30_s26, 2  ;;  %p161_p1 = scmp.ne.s32.totalorder %s819_s20, %s815_s19 }
   0x7   : > { %p162_p2 = scmp.eq.s32.totalorder %s647_s24, 1  ;;  %p167_p3 = scmp.ne.s32.totalorder %s815_s19, %s811_s18 }
   0x8   : > { %s1081_s26 = smov (%p32_p0, %s30_s26), 0  ;;  %p168_p5 = scmp.eq.s32.totalorder %s648_s25, 1 }
   0x9   : > { %p906_p4 = por %p162_p2, %p161_p1  ;;  %s146_s29 = ssub.s32 %s827_s22, %s1081_s26 }
   0xa   : > { %p651_p6 = scmp.ge.s32.totalorder %s831_s23, 1  ;;  %p149_p7 = scmp.eq.s32.totalorder %s146_s29, 0 }
   0xb   : > { %p913_p8 = por %p168_p5, %p167_p3  ;;  %p211_p9 = scmp.lt.s32.totalorder %s831_s23, 3 }
   0xc   : > { %s919_s6 = scalar_select %p149_p7, %s819_s20, %s151_s27  }
   0xd   : > { %p212_p10 = pnand %p651_p6, %p211_p9 }
   0xe   : > { %p244_p11 = scmp.lt.s32.totalorder (!%p212_p10), %s823_s21, 1  ;;  %v833_v0 = vmov (!%p212_p10), 0.0   ;;  %v259_v1 = vld [vmem:[%s1069_s2] sm:$0xff] (!%p212_p10)  ;;  %v834_v2 = vmov (!%p212_p10), 0   ;;  %v261_v3 = vld [vmem:[%s1069_s2 + $0x10] sm:$0xff] (!%p212_p10)  ;;  %v260_v4 = vld [vmem:[%s1069_s2 + $0x8] sm:$0xff] (!%p212_p10) }
   0xf   : > { %215 = sbr.rel (%p212_p10) target bundleno = 524 (0x20c), region = 40  ;;  %367 = vmatprep.mubr.f32.mxu0 (!%p212_p10), %v833_v0  ;;  %539 = vmatprep.mubr.f32.mxu1 (!%p212_p10), %v833_v0  ;;  %v262_v5 = vld [vmem:[%s1069_s2 + $0x18] sm:$0xff] (!%p212_p10)  ;;  %vm298_vm0 = vcmask (!%p212_p10), 1043456   ;;  %v255_v8 = vld [vmem:[%s1068_s1] sm:$0xff] (!%p212_p10)  ;;  %vm285_vm1 = vcmask (!%p212_p10), 31744   ;;  %v256_v10 = vld [vmem:[%s1068_s1 + $0x8] sm:$0xff] (!%p212_p10) }
  0x10   : > { %734 = vset.pattern.permute.xlu0 (!%p212_p10), %v834_v2  ;;  %735 = vset.pattern.permute.xlu1 (!%p212_p10), %v834_v2  ;;  %v465_v9 = vld [vmem:[%s1071_s4] sm:$0xf] (!%p212_p10)  ;;  %v257_v11 = vld [vmem:[%s1068_s1 + $0x10] sm:$0xff] (!%p212_p10)  ;;  %v258_v12 = vld [vmem:[%s1068_s1 + $0x18] sm:$0xff] (!%p212_p10)  ;;  %vm471_vm2 = vcmask (!%p212_p10), 261120   ;;  %s240_s17 = sand.u32 (!%p212_p10), 1, %s815_s19  }
  0x11   : > { %265 = vperm.xlu0 (!%p212_p10), %734, %v259_v1   ;;  %275 = vperm.xlu1 (!%p212_p10), %735, %v261_v3   ;;  %s652_s24 = sshll.u32 (!%p212_p10), %s240_s17, 3  ;;  %s555_s10 = scalar_lea.sflag (!%p212_p10), [#allocation3], %s240_s17 }
  0x12   : > { %s242_s27 = scalar_lea.vmem (!%p212_p10), [#allocation2], %s652_s24 }
  0x13   : > { %s571_s29 = sshll.u32 (!%p212_p10), %s242_s27, 4  ;;  %s1022_s29 = int_to_ptr.vmem [resolvable:$true] %s571_s29 }
  0x14   : > { %s753_s11 = scalar_lea.vmem (!%p212_p10), %s1022_s29, 128 }
  0x15   : > { %270 = vperm.xlu0 (!%p212_p10), %734, %v260_v4   ;;  %280 = vperm.xlu1 (!%p212_p10), %735, %v262_v5   ;;  %p754_p12 = scmp.ne.s32.totalorder (!%p212_p10), %s1022_s29, %s753_s11 }
  0x16   : > { %s245_s9 = scalar_select %p244_p11, %s823_s21, 1 }
  0x17   : > { %p755_p13 = pnand %p754_p12, %p906_p4 }
  0x18   : > { %s667_s12 = sshll.u32 %s245_s9, 3 }
  0x19   : > { %s251_s25 = scalar_lea.vmem %s1067_s0, %s667_s12  ;;  %468 = vperm.xlu0 %734, %v465_v9   ;;  %p756_p0 = pneg %p755_p13 }
  0x1a   : > { %v938_v6 = vld [vmem:[%s251_s25] sm:$0xff]  ;;  %s668_s25 = sshll.u32 %s823_s21, 7  ;;  %s835_s21 = smov [#allocation2]  }
  0x1b   : > { %v942_v7 = vcombine.high %v938_v6, %v938_v6  ;;  %s1020_s9 = scalar_lea.hbm %s1072_s5, %s668_s25  ;;  %s757_s12 = sshll.u32 %s835_s21, 4  ;;  %s758_s12 = int_to_ptr.vmem [resolvable:$false] %s757_s12 }
  0x1c   : > { %s759_s13 = scalar_lea.vmem %s758_s12, 256  ;;  %p760_p1 = scmp.lt.s32.totalorder %s1022_s29, %s758_s12 }
  0x1d   : > { %655 = vmatprep.subr.msk.mxu0 %vm298_vm0, %v942_v7  ;;  %p761_p2 = scmp.lt.s32.totalorder %s759_s13, %s753_s11 }
  0x1e   : > { %656 = vmatpush1.msk.msra.mxu0 %vm298_vm0, %v938_v6 }
  0x1f   : > { %657 = vmatmul.mubr.msk.f32.vlgmr.msra.gmra.mrb[0].mxu0 %vm285_vm1, %v255_v8  ;;  %p762_p3 = por %p761_p2, %p760_p1 }
  0x20   : > { %373 = vmatprep.mubr.f32.mxu0 %v833_v0 }
  0x21   : > { %p763_p5 = pnand %p762_p3, %p756_p0 }
  0x23   : > { %658 = vmatmul.mubr.msk.f32.gmra.mrb[2].mxu0 %vm285_vm1, %v256_v10 }
  0x24   : > { %379 = vmatprep.mubr.f32.mxu0 %v833_v0 }
  0x27   : > { %659 = vmatmul.mubr.msk.f32.gmra.mrb[4].mxu0 %vm285_vm1, %v257_v11 }
  0x28   : > { %385 = vmatprep.mubr.f32.mxu0 %v833_v0 }
  0x2b   : > { %660 = vmatmul.mubr.msk.f32.gmra.mrb[6].mxu0 %vm285_vm1, %v258_v12 }
  0x90   : > { %v266_v13 = vpop.permute.xlu0 %265  ;;  %v276_v26 = vpop.permute.xlu1 %275 }
  0x94   : > { %v271_v19 = vpop.permute.xlu0 %270  ;;  %v281_v44 = vpop.permute.xlu1 %280 }
  0xf2   : > { %v369_v14 = vpop.f32.mrb[0].mxu0 }
  0xf3   : > { %v961_v15 = vadd.f32 %v369_v14, %v266_v13  ;;  %v371_v16 = vpop.f32.mrb[1].mxu0 }
  0xf4   : > { %v963_v17 = vadd.f32 %v371_v16, %v266_v13 }
  0xf5   : > { %v392_v18 = vmul.f32 %v961_v15, %v961_v15 }
  0xf6   : > { %v393_v20 = vmul.f32 %v963_v17, %v963_v17  ;;  %v375_v21 = vpop.f32.mrb[2].mxu0 }
  0xf7   : > { %v400_v22 = vmul.f32 %v392_v18, %v961_v15  ;;  %v970_v23 = vadd.f32 %v375_v21, %v271_v19  ;;  %v377_v24 = vpop.f32.mrb[3].mxu0 }
  0xf8   : > { %v401_v25 = vmul.f32 %v393_v20, %v963_v17  ;;  %v973_v27 = vadd.f32 %v377_v24, %v271_v19 }
  0xf9   : > { %v408_v28 = vmul.f32 0.044715, %v400_v22  ;;  %v394_v29 = vmul.f32 %v970_v23, %v970_v23 }
  0xfa   : > { %v409_v30 = vmul.f32 0.044715, %v401_v25  ;;  %v395_v31 = vmul.f32 %v973_v27, %v973_v27  ;;  %v381_v32 = vpop.f32.mrb[4].mxu0 }
  0xfb   : > { %v416_v33 = vadd.f32 %v408_v28, %v961_v15  ;;  %v402_v34 = vmul.f32 %v394_v29, %v970_v23  ;;  %v981_v35 = vadd.f32 %v381_v32, %v276_v26  ;;  %v383_v36 = vpop.f32.mrb[5].mxu0 }
  0xfc   : > { %v403_v37 = vmul.f32 %v395_v31, %v973_v27  ;;  %v984_v38 = vadd.f32 %v383_v36, %v276_v26  ;;  %v417_v39 = vadd.f32 %v409_v30, %v963_v17 }
  0xfd   : > { %v424_v40 = vmul.f32 0.7978846, %v416_v33  ;;  %v410_v41 = vmul.f32 0.044715, %v402_v34  ;;  %v396_v42 = vmul.f32 %v981_v35, %v981_v35 }
  0xfe   : > { %v411_v43 = vmul.f32 0.044715, %v403_v37  ;;  %v397_v45 = vmul.f32 %v984_v38, %v984_v38  ;;  %v387_v46 = vpop.f32.mrb[6].mxu0  ;;  %v425_v47 = vmul.f32 0.7978846, %v417_v39 }
  0xff   : > { %v418_v48 = vadd.f32 %v410_v41, %v970_v23  ;;  %v404_v49 = vmul.f32 %v396_v42, %v981_v35  ;;  %v993_v50 = vadd.f32 %v387_v46, %v281_v44  ;;  %v389_v51 = vpop.f32.mrb[7].mxu0  ;;  %737 = vtanh.f32 %v424_v40 }
 0x100   : > { %v405_v52 = vmul.f32 %v397_v45, %v984_v38  ;;  %v390_v53 = vadd.f32 %v389_v51, %v281_v44  ;;  %v419_v54 = vadd.f32 %v411_v43, %v973_v27  ;;  %739 = vtanh.f32 %v425_v47  ;;  %v469_v51 = vpop.permute.xlu0 %468 }
 0x101   : > { %v426_v55 = vmul.f32 0.7978846, %v418_v48  ;;  %v412_v56 = vmul.f32 0.044715, %v404_v49  ;;  %v398_v57 = vmul.f32 %v993_v50, %v993_v50  ;;  %v464_v49 = vld [vmem:[%s1070_s3] sm:$0xf] }
 0x102   : > { %v413_v58 = vmul.f32 0.044715, %v405_v52  ;;  %v399_v59 = vmul.f32 %v390_v53, %v390_v53  ;;  %v427_v60 = vmul.f32 0.7978846, %v419_v54 }
 0x103   : > { %v420_v61 = vadd.f32 %v412_v56, %v981_v35  ;;  %v406_v62 = vmul.f32 %v398_v57, %v993_v50  ;;  %741 = vtanh.f32 %v426_v55 }
 0x104   : > { %v421_v63 = vadd.f32 %v413_v58, %v984_v38  ;;  %v407_v0 = vmul.f32 %v399_v59, %v390_v53  ;;  %743 = vtanh.f32 %v427_v60 }
 0x105   : > { %v428_v1 = vmul.f32 0.7978846, %v420_v61  ;;  %v414_v2 = vmul.f32 0.044715, %v406_v62 }
 0x106   : > { %v429_v3 = vmul.f32 0.7978846, %v421_v63  ;;  %v415_v4 = vmul.f32 0.044715, %v407_v0 }
 0x107   : > { %745 = vtanh.f32 %v428_v1  ;;  %v422_v5 = vadd.f32 %v414_v2, %v993_v50 }
 0x108   : > { %747 = vtanh.f32 %v429_v3  ;;  %v423_v8 = vadd.f32 %v415_v4, %v390_v53 }
 0x109   : > { %v738_v9 = vpop.eup %737  ;;  %v430_v10 = vmul.f32 0.7978846, %v422_v5 }
 0x10a   : > { %v740_v11 = vpop.eup %739  ;;  %v431_v12 = vmul.f32 0.7978846, %v423_v8  ;;  %v440_v13 = vadd.f32 1.0, %v738_v9 }
 0x10b   : > { %749 = vtanh.f32 %v430_v10  ;;  %v441_v14 = vadd.f32 1.0, %v740_v11 }
 0x10c   : > { %751 = vtanh.f32 %v431_v12  ;;  %v448_v20 = vmul.f32 0.5, %v440_v13 }
 0x10d   : > { %v742_v16 = vpop.eup %741  ;;  %v449_v22 = vmul.f32 0.5, %v441_v14 }
 0x10e   : > { %v744_v18 = vpop.eup %743  ;;  %v442_v19 = vadd.f32 1.0, %v742_v16  ;;  %v456_v29 = vmul.f32 %v448_v20, %v961_v15 }
 0x10f   : > { %v443_v21 = vadd.f32 1.0, %v744_v18  ;;  %v457_v32 = vmul.f32 %v449_v22, %v963_v17 }
 0x110   : > { %v450_v24 = vmul.f32 0.5, %v442_v19 }
 0x111   : > { %v746_v25 = vpop.eup %745  ;;  %v451_v26 = vmul.f32 0.5, %v443_v21 }
 0x112   : > { %v748_v28 = vpop.eup %747  ;;  %v458_v30 = vmul.f32 %v450_v24, %v970_v23  ;;  %v444_v31 = vadd.f32 1.0, %v746_v25 }
 0x113   : > { %v459_v33 = vmul.f32 %v451_v26, %v973_v27  ;;  %v445_v34 = vadd.f32 1.0, %v748_v28 }
 0x114   : > { %v671_v36 = vpack.c.bf16 %v458_v30, %v456_v29  ;;  %v452_v42 = vmul.f32 0.5, %v444_v31 }
 0x115   : > { %v750_v37 = vpop.eup %749  ;;  %v669_v39 = vpack.c.bf16 %v459_v33, %v457_v32  ;;  %v453_v44 = vmul.f32 0.5, %v445_v34 }
 0x116   : > { %v752_v40 = vpop.eup %751  ;;  %v446_v41 = vadd.f32 1.0, %v750_v37  ;;  %v460_v23 = vmul.f32 %v452_v42, %v981_v35 }
 0x117   : > { %670 = vmatprep.subr.bf16.mxu1 %v669_v39  ;;  %v447_v43 = vadd.f32 1.0, %v752_v40  ;;  %v461_v27 = vmul.f32 %v453_v44, %v984_v38 }
 0x118   : > { %672 = vmatpush1.bf16.msra.mxu1 %v671_v36  ;;  %v454_v15 = vmul.f32 0.5, %v446_v41 }
 0x119   : > { %v455_v45 = vmul.f32 0.5, %v447_v43 }
 0x11a   : > { %v462_v17 = vmul.f32 %v454_v15, %v993_v50 }
 0x11b   : > { %v463_v46 = vmul.f32 %v455_v45, %v390_v53 }
 0x11c   : > { %v675_v47 = vpack.c.bf16 %v462_v17, %v460_v23 }
 0x11d   : > { %v673_v48 = vpack.c.bf16 %v463_v46, %v461_v27 }
 0x11f   : > { %674 = vmatprep.subr.bf16.mxu1 %v673_v48 }
 0x120   : > { %676 = vmatpush1.bf16.msra.mxu1 %v675_v47 }
 0x123   : > { %661 = vmatmul.mubr.msk.f32.vlgmr.msra.gmra.mrb[0].mxu1 %vm471_vm2, %v464_v49 }
 0x1f6   : > { %v541_v35 = vpop.f32.mrb[0].mxu1 }
 0x1f7   : > { %v542_v50 = vadd.f32 %v541_v35, %v469_v51  ;;  %v543_v52 = vpop.f32.mrb[1].mxu1 }
 0x1f8   : > { %v544_v38 = vadd.f32 %v543_v52, %v469_v51 }
 0x1f9   : > { %v547_v53 = vadd.f32 %v542_v50, %v938_v6 }
 0x1fa   : > { %v548_v54 = vadd.f32 %v544_v38, %v942_v7 }
 0x1fc   : > { %v551_v55 = vcombine.low %v547_v53, %v548_v54 }
 0x1fe   : > { %553 = vst [vmem:[%s242_s27] sm:$0xff] %v551_v55 }
 0x1ff   : > { %766 = shalt.err (!%p763_p5)
}
 0x200   : > { %s767_s14 = scalar_lea.hbm %s1020_s9, 128  ;;  %s771_s17 = scalar_lea.hbm %s1072_s5, 256 }
 0x201   : > { %p768_p6 = scmp.ne.s32.totalorder %s1020_s9, %s767_s14  ;;  %p772_p10 = scmp.lt.u32.totalorder %s1020_s9, %s1072_s5 }
 0x202   : > { %p773_p11 = scmp.lt.u32.totalorder %s771_s17, %s767_s14  ;;  %p775_p13 = scmp.lt.u32.totalorder %s767_s14, %s1020_s9 }
 0x203   : > { %p769_p7 = pnand %p768_p6, %p906_p4 }
 0x204   : > { %p774_p12 = por %p773_p11, %p772_p10 }
 0x205   : > { %p770_p9 = pneg %p769_p7 }
 0x206   : > { %p776_p0 = por %p775_p13, %p774_p12 }
 0x208   : > { %p777_p1 = pnand %p776_p0, %p770_p9 }
 0x20a   : > { %780 = shalt.err (!%p777_p1)
}
 0x20b   : > { %677 = dma.vmem_to_hbm [thread:$0]  (%p906_p4), %s1022_s29, 128, %s1020_s9, %s555_s10  }
 0x20c PF: > { %p683_p2 = scmp.ge.s32.totalorder %s831_s23, 2  ;;  %s583_s27 = sand.u32 1, %s811_s18  }
 0x20d   : > { %s584_s7 = scalar_lea.sflag [#allocation3], %s583_s27 }
 0x20e   : > { %p680_p3 = pnand %p683_p2, %p913_p8 }
 0x210   : > { %806 = dma.done.wait (!%p680_p3), %s584_s7, 128  }
 0x211   : > { %808 = vsyncadd (!%p680_p3), %s584_s7, 4294967168  ;;  %s18_s23 = sadd.s32 1, %s831_s23   ;;  %s1075_s18 = smov %s815_s19 }
 0x212   : > { %p15_p5 = scmp.ge.s32.totalorder %s18_s23, 4   ;;  %s1076_s19 = smov %s819_s20 }
 0x213   : > { %s1077_s20 = smov %s919_s6  ;;  %s1078_s21 = smov %s827_s22 }
 0x214   : > { %s1079_s22 = smov %s1081_s26  ;;  %17 = sbr.rel (!%p15_p5) target bundleno = 4 (0x4), region = 75 }
 0x21b   :  { %589 = vsyncpa [#allocation3], 1 }
 0x21c   :  { %591 = vsyncpa [#allocation3 + $0x1], 1 }

</bundles_post_ra>
